<compile_context>
chip_gen: v7x
topology: tpu7x:2x2x1
jax: 0.10.0
libtpu: 0.0.40
codegen_flags: <defaults>
</compile_context>

<pallas_src>
import enum
import functools

import jax
import jax.numpy as jnp
from jax import lax
from jax.experimental import pallas as pl
from jax.experimental.pallas import tpu as pltpu

_LANE = 128
# Per-buffer block budget. Double-buffered in + out => ~4x this in VMEM, well
# under every generation's scoped default (v5e 16 MiB, v6e/v7x 32 MiB).
_BLOCK_BYTES = 2 * 1024 * 1024
# At/below this size: single full-array block, no grid/pipeline overhead.
_SINGLE_BLOCK_BYTES = 2 * 1024 * 1024


def _round_up(x: int, m: int) -> int:
    return ((x + m - 1) // m) * m


def _sublane_multiple(dtype) -> int:
    """Minimum packed sublane tile: 8 rows for 32-bit, 16 for 16-bit, 32 for 8-bit."""
    return max(8, 32 // jnp.dtype(dtype).itemsize)


# ----------------------------------------------------------------------------
# Pallas kernels: fused identity copy + partial-sum (for the mean statistic).
# ----------------------------------------------------------------------------
def _copy_mean_single_kernel(x_ref, o_ref, sum_ref):
    x = x_ref[...]
    o_ref[...] = x
    sum_ref[0] = jnp.sum(x.astype(jnp.float32))


def _make_copy_mean_kernel(total_rows: int, block_rows: int, block_cols: int):
    ragged = (total_rows % block_rows) != 0

    def kernel(x_ref, o_ref, psum_ref):
        x = x_ref[...]
        o_ref[...] = x  # Pallas masks the store of a partial last block.
        xf = x.astype(jnp.float32)
        if ragged:
            # Mask out-of-range rows of the last (partial) block so garbage in
            # the VMEM buffer never pollutes the sum.
            valid = total_rows - pl.program_id(0) * block_rows
            row_ids = lax.broadcasted_iota(jnp.int32, (block_rows, block_cols), 0)
            xf = jnp.where(row_ids < valid, xf, 0.0)
        psum_ref[0] = jnp.sum(xf)

    return kernel


@jax.jit
def pallas_identity_with_mean(x: jax.Array):
    """Exact pass-through of `x` plus its mean (f32), fused in one Pallas pass."""
    shape, dtype = x.shape, x.dtype
    n = x.size
    if n == 0:
        # Nothing to copy; mean of an empty tensor is NaN (matches jnp/torch).
        return x, jnp.full((), jnp.nan, jnp.float32)

    itemsize = jnp.dtype(dtype).itemsize
    nbytes = n * itemsize

    # --- small tensors: one full-array block, no grid / pipeline setup -------
    if nbytes <= _SINGLE_BLOCK_BYTES:
        cols = _LANE if n % _LANE == 0 else n
        rows = n // cols
        x2d = x.reshape(rows, cols)
        y2d, s = pl.pallas_call(
            _copy_mean_single_kernel,
            out_shape=(
                jax.ShapeDtypeStruct((rows, cols), dtype),
                jax.ShapeDtypeStruct((1,), jnp.float32),
            ),
            in_specs=[pl.BlockSpec(memory_space=pltpu.MemorySpace.VMEM)],
            out_specs=(
                pl.BlockSpec(memory_space=pltpu.MemorySpace.VMEM),
                pl.BlockSpec(memory_space=pltpu.MemorySpace.SMEM),
            ),
        )(x2d)
        return y2d.reshape(shape), s[0] / n

    # --- large tensors: lane-dense slab, big VMEM-sized blocks ---------------
    flat = x.reshape(-1)
    pad = (-n) % _LANE
    if pad:
        # Rare ragged case only: padding (and the final slice) is an extra HBM
        # pass, so it is applied only when the size is not 128-aligned.  The
        # zero padding contributes 0 to the sum, so the mean stays exact.
        flat = jnp.pad(flat, (0, pad))
    n_pad = flat.shape[0]

    cols = next(c for c in (4096, 2048, 1024, 512, 256, 128) if n_pad % c == 0)
    rows = n_pad // cols
    sub = _sublane_multiple(dtype)
    block_rows = max(sub, (_BLOCK_BYTES // (cols * itemsize)) // sub * sub)
    block_rows = min(block_rows, _round_up(rows, sub))
    grid = pl.cdiv(rows, block_rows)

    x2d = flat.reshape(rows, cols)
    kernel = _make_copy_mean_kernel(rows, block_rows, cols)
    y2d, psums = pl.pallas_call(
        kernel,
        out_shape=(
            jax.ShapeDtypeStruct((rows, cols), dtype),
            jax.ShapeDtypeStruct((grid,), jnp.float32),
        ),
        grid=(grid,),
        in_specs=[pl.BlockSpec((block_rows, cols), lambda i: (i, 0))],
        out_specs=(
            pl.BlockSpec((block_rows, cols), lambda i: (i, 0)),
            pl.BlockSpec((1,), lambda i: (i,), memory_space=pltpu.MemorySpace.SMEM),
        ),
        compiler_params=pltpu.CompilerParams(
            dimension_semantics=("parallel",),  # lets v7x shard the grid on 2 TCs
            vmem_limit_bytes=32 * 1024 * 1024,
        ),
    )(x2d)

    mean = jnp.sum(psums) / n
    y = y2d.reshape(-1)[:n].reshape(shape) if pad else y2d.reshape(shape)
    return y, mean


# ----------------------------------------------------------------------------
# JAX-side ports of BaseIO / TrainState / BaseNetwork (no torch).
# ----------------------------------------------------------------------------
class BaseIO:
    """JAX port of dl_engine BaseIO: keyed tensor container."""

    def __init__(self):
        self.losses: dict = dict()
        self.metrics: dict = dict()
        self.statistics: dict = dict()

    def launch_from_str_dict(self, tensors):
        for src_key, src_value in tensors.items():
            assert hasattr(self, src_key), (
                f"Key {src_key} not found in {self.__class__.__name__}"
            )
            setattr(self, src_key, src_value)
        return self

    def convert_to_str_dict(self, out_descs):
        if out_descs is None:
            out_descs = dict()
        str_dict = dict()
        for dst_key in out_descs.values():
            assert hasattr(self, dst_key), (
                f"Key {dst_key} not found in {self.__class__.__name__}"
            )
            str_dict[dst_key] = getattr(self, dst_key)
        str_dict["losses"] = self.losses
        str_dict["metrics"] = self.metrics
        str_dict["statistics"] = self.statistics
        return str_dict


class TrainState(enum.Enum):
    TRAINABLE = 0
    FIX_ALL = 1
    FIX_VARIABLE = 2


class BaseNetwork:
    """JAX/Pallas port of dl_engine BaseNetwork (no parameters in the base class)."""

    IO_INTERFACE = BaseIO

    def __init__(self, in_descs=None, out_descs=None, weights_path=None,
                 io_type=BaseIO, name=None, trainable=None):
        if self.__class__.IO_INTERFACE != BaseIO:
            io_type = self.__class__.IO_INTERFACE
        self._io_type = io_type
        self._weights_path = weights_path  # TODO(synk): torch.load checkpoint restore (file I/O) is out of scope here.
        self._name = name
        if isinstance(trainable, str):
            trainable = TrainState[trainable.upper()]
        elif isinstance(trainable, TrainState):
            pass
        elif trainable is None:
            trainable = TrainState.TRAINABLE
        self._trainable = trainable
        self._initialized = False
        self._local_rank = 0   # TODO(synk): torch.distributed rank / .to(cuda) / requires_grad_ have no Pallas equivalent.
        self._global_rank = 0
        self._in_descs = in_descs if in_descs is not None else dict()
        self._out_descs = out_descs if out_descs is not None else dict()

    @property
    def in_descs(self):
        return self._in_descs

    @property
    def out_descs(self):
        return self._out_descs

    @property
    def io_type(self):
        return self._io_type

    @property
    def trainable(self):
        return self._trainable

    def initialize(self, **extra_kwargs):
        del extra_kwargs
        if not self._initialized:
            self._initialized = True

    def _run(self, io_proto, **extra_kwargs):
        # Abstract in the PyTorch base class.
        raise NotImplementedError

    def parse_input(self, inputs):
        parsed_dict = dict()
        for in_name, in_tensor in inputs.items():
            if in_name not in self._in_descs.keys():
                continue
            parsed_dict[self._in_descs[in_name]] = in_tensor
        return parsed_dict

    def parse_output(self, outputs):
        parsed_dict = dict()
        for out_name, out_tensor in outputs.items():
            if out_name not in self._out_descs.values():
                continue
            raw_name, = [_k for _k, _v in self._out_descs.items() if _v == out_name]
            parsed_dict[raw_name] = out_tensor
        return parsed_dict

    def forward(self, inputs, **extra_kwargs):
        if not self._initialized:
            self.initialize()
        if isinstance(inputs, dict):
            io_instance = self._io_type().launch_from_str_dict(inputs)
        elif isinstance(inputs, BaseIO):
            io_instance = inputs
        else:
            raise NotImplementedError(f"Input type {type(inputs)} not supported")
        self._run(io_instance, **extra_kwargs)
        if isinstance(inputs, dict):
            return io_instance.convert_to_str_dict(self._out_descs)
        return io_instance

    __call__ = forward


# ----------------------------------------------------------------------------
# Minimal concrete IO + network exercising the forward pass.  `_run` routes the
# input through the fused Pallas copy+mean kernel (the only tensor work the
# BaseNetwork forward contract implies for the routed tensors).
# ----------------------------------------------------------------------------
class FeatureIO(BaseIO):
    def __init__(self):
        super().__init__()
        self.feature = None
        self.feature_out = None


class IdentityNetwork(BaseNetwork):
    IO_INTERFACE = FeatureIO

    def _run(self, io_proto, **extra_kwargs):
        del extra_kwargs
        # Fused: identity pass-through + mean statistic in a single HBM sweep.
        y, mean = pallas_identity_with_mean(io_proto.feature)
        io_proto.feature_out = y
        io_proto.statistics["feature_mean"] = mean


if __name__ == "__main__":
    key = jax.random.PRNGKey(0)

    net = IdentityNetwork(
        in_descs={"x": "feature"},
        out_descs={"y": "feature_out"},
        name="identity_net",
        trainable="trainable",
    )

    # 1) Small NCHW input (single-block, no-grid path): batch=2, channels=4, 16x16.
    x = jax.random.normal(key, (2, 4, 16, 16), dtype=jnp.float32)
    out = net({"feature": x})
    y = jax.block_until_ready(out["feature_out"])
    mean = jax.block_until_ready(out["statistics"]["feature_mean"])
    assert y.shape == x.shape and y.dtype == x.dtype
    assert bool(jnp.allclose(y, x))
    assert bool(jnp.allclose(mean, jnp.mean(x), atol=1e-4, rtol=1e-3))
    assert set(out.keys()) == {"feature_out", "losses", "metrics", "statistics"}

    # 2) Larger input (gridded, lane-dense big-block path): 4 MiB f32.
    x2 = jax.random.normal(jax.random.fold_in(key, 1), (4, 8, 128, 256), dtype=jnp.float32)
    out2 = net({"feature": x2})
    y2 = jax.block_until_ready(out2["feature_out"])
    mean2 = jax.block_until_ready(out2["statistics"]["feature_mean"])
    assert y2.shape == x2.shape and y2.dtype == x2.dtype
    assert bool(jnp.allclose(y2, x2))
    assert bool(jnp.allclose(mean2, jnp.mean(x2), atol=1e-4, rtol=1e-3))

    print("KERNEL_OK")
</pallas_src>

<mosaic_0001>
module attributes {stable_mosaic.version = 11 : i64} {
  func.func @_copy_mean_single_kernel(%arg0: memref<16x128xf32, #tpu.memory_space<vmem>>, %arg1: memref<16x128xf32, #tpu.memory_space<vmem>>, %arg2: memref<1xf32, #tpu.memory_space<smem>>) attributes {dimension_semantics = [], scalar_prefetch = 0 : i64, scratch_operands = 0 : i64, tpu.core_type = #tpu.core_type<tc>} {
    %c0 = arith.constant 0 : index
    %c0_0 = arith.constant 0 : index
    %0 = vector.load %arg0[%c0, %c0_0] : memref<16x128xf32, #tpu.memory_space<vmem>>, vector<16x128xf32>
    %c0_1 = arith.constant 0 : index
    %c0_2 = arith.constant 0 : index
    %1 = vector.load %arg1[%c0_1, %c0_2] : memref<16x128xf32, #tpu.memory_space<vmem>>, vector<16x128xf32>
    tpu.vector_store %arg1[%c0_1, %c0_2], %0 {strides = array<i32>} : memref<16x128xf32, #tpu.memory_space<vmem>>, vector<16x128xf32>,
    %2 = vector.shape_cast %0 : vector<16x128xf32> to vector<1x16x128xf32>
    %cst = arith.constant dense<0.000000e+00> : vector<1xf32>
    %3 = vector.multi_reduction <add>, %2, %cst [1, 2] : vector<1x16x128xf32> to vector<1xf32>
    %4 = vector.shape_cast %3 : vector<1xf32> to vector<1x1x1xf32>
    %5 = vector.extract %4[0, 0, 0] : f32 from vector<1x1x1xf32>
    %c0_3 = arith.constant 0 : index
    %6 = memref.load %arg2[%c0_3] : memref<1xf32, #tpu.memory_space<smem>>
    memref.store %5, %arg2[%c0_3] : memref<1xf32, #tpu.memory_space<smem>>
    return
  }
}

</mosaic_0001>

<bundles_post_ra>
// kernel: pallas_identity_with_mean.1
= control target key start
LH: loop header
LB: loop body
LE: loop exit
PB: predicated region body
PF: predicated region fallthrough
CT: control target
= control target key end

     0   :  { %s99_s0 = inlined_call_operand.vmem [shape: f32[16,128], index: 0, kind: input, shape index: {}]   ;;  %s100_s1 = inlined_call_operand.vmem [shape: f32[16,128], index: 1, kind: output, shape index: {0}]   ;;  %s101_s2 = inlined_call_operand.hbm [shape: f32[1], index: 2, kind: output, shape index: {1}]  }
   0x1   :  { %v11_v0 = vld [vmem:[%s99_s0] sm:$0xff]  ;;  %v12_v1 = vld [vmem:[%s99_s0 + $0x8] sm:$0xff] }
   0x2   :  { %8 = vsyncpa [#allocation3], 0  ;;  %13 = vst [vmem:[%s100_s1] sm:$0xff] %v11_v0  ;;  %v15_v2 = vadd.f32 %v12_v1, %v11_v0  ;;  %s47_s19 = scalar_lea.hbm %s101_s2, 16 }
   0x3   :  { %14 = vst [vmem:[%s100_s1 + $0x8] sm:$0xff] %v12_v1  ;;  %p48_p0 = scmp.ne.s32.totalorder %s101_s2, %s47_s19  ;;  %p51_p1 = scmp.lt.u32.totalorder %s47_s19, %s101_s2 }
   0x4   :  { %16 = vadd.xlane.f32.xlu0 %v15_v2 }
   0x5   :  { %p53_p2 = pnand %p51_p1, %p48_p0 }
  0x91   :  { %v17_v3 = vpop.xlane.xlu0 %16 }
  0x92   :  { %v18_v4 = vrot.slane %v17_v3, 4 }
  0x94   :  { %v19_v5 = vadd.f32 %v18_v4, %v17_v3 }
  0x96   :  { %v20_v6 = vrot.slane %v19_v5, 2 }
  0x98   :  { %v21_v7 = vadd.f32 %v20_v6, %v19_v5 }
  0x9a   :  { %v22_v8 = vrot.slane %v21_v7, 1 }
  0x9c   :  { %v23_v9 = vadd.f32 %v22_v8, %v21_v7 }
  0x9e   :  { %44 = vpush %v23_v9 }
  0xcf   :  { %s45_s0 = spop %44 }
  0xd0   :  { %26 = sst [smem:[#allocation2]] %s45_s0 }
  0xd1   :  { %56 = shalt.err (!%p53_p2)
}
  0xd2   :  { %s59_s23 = smov [#allocation2]  }
  0xd3   :  { %36 = dma.smem_to_hbm %s59_s23, 16, %s101_s2, [#allocation3]  }
  0xd4   :  { %57 = dma.done.wait [#allocation3], 16  }
  0xd5   :  { %58 = vsyncadd [#allocation3], 4294967280 }
  0xd6   :  { %42 = sfence }
  0xd7   :  { %43 = vsyncpa [#allocation3], 1 }

</bundles_post_ra>
